<compile_context>
chip_gen: v7x
topology: tpu7x:2x2x1
jax: 0.10.0
libtpu: 0.0.40
codegen_flags: <defaults>
</compile_context>

<pallas_src>
import functools

import jax
import jax.numpy as jnp
from jax.experimental import pallas as pl
from jax.experimental.pallas import tpu as pltpu

HIDDEN = 768    # backbone hidden size (BERT-base)
FC1 = 512
NCLASS = 2
NPAD = 128      # lane-dense width: fc2 cols and output padded to a full vreg lane width


def _round_up(x, m):
    return (x + m - 1) // m * m


def head_kernel(x_ref, w1_ref, b1_ref, w2_ref, b2_ref, o_ref):
    # x_ref : (TB, 768)  f32 (cast to bf16 in-kernel)   w1_ref: (768, 512) bf16
    # b1_ref: (1, 512)   f32                            w2_ref: (512, 128) bf16 (cols >= 2 zero)
    # b2_ref: (1, 128)   f32                            o_ref : (TB, 128)  f32 (lane-dense)
    # fc1 + ReLU : bf16 MXU matmul with f32 accumulation; x cast hidden under MXU.
    xb = x_ref[...].astype(jnp.bfloat16)
    h = jnp.dot(xb, w1_ref[...], preferred_element_type=jnp.float32)
    h = jnp.maximum(h + b1_ref[...], 0.0)

    # fc2 on a lane-dense (512, 128) padded weight tile
    logits = jnp.dot(h.astype(jnp.bfloat16), w2_ref[...],
                     preferred_element_type=jnp.float32) + b2_ref[...]

    # 2-class LogSoftmax in closed form (per-lane VPU + EUP work only, no XLU
    # cross-lane reductions): lp0 = -log(1+exp(l1-l0)), lp1 = -log(1+exp(l0-l1))
    z = logits[:, 1:2] - logits[:, 0:1]                                  # (TB, 1)
    softplus = lambda t: jnp.maximum(t, 0.0) + jnp.log(1.0 + jnp.exp(-jnp.abs(t)))
    lp0 = -softplus(z)                                                   # (TB, 1)
    lp1 = -softplus(-z)                                                  # (TB, 1)

    # Lane-dense full-width store (column 0 -> lp0, every other lane -> lp1);
    # only the first 2 lanes are read back by the wrapper.
    col = jax.lax.broadcasted_iota(jnp.int32, o_ref.shape, 1)            # (TB, 128)
    o_ref[...] = jnp.where(col == 0, lp0, lp1)


def prepare_head_params(w1, b1, w2, b2):
    """One-time weight formatting (hoisted out of the per-call path)."""
    # bf16 weight storage halves the dominant (w1) HBM DMA; f32 accumulation in-kernel.
    w1b = w1.astype(jnp.bfloat16)
    w2p = jnp.zeros((FC1, NPAD), jnp.float32).at[:, :NCLASS].set(w2).astype(jnp.bfloat16)
    b1r = b1.reshape(1, FC1).astype(jnp.float32)
    b2p = jnp.zeros((1, NPAD), jnp.float32).at[:, :NCLASS].set(b2.reshape(1, NCLASS))
    return w1b, b1r, w2p, b2p


@functools.partial(jax.jit, static_argnames=("tile_b",))
def classifier_head(cls_hs, w1b, b1r, w2p, b2p, *, tile_b=512):
    B = cls_hs.shape[0]
    SUB = 8                                    # f32 x -> 8-row sublane packing suffices
    Bp0 = _round_up(B, SUB)
    tb = min(tile_b, Bp0)
    # Guarantee >= 2 grid steps when possible so both v7x TensorCores get work.
    if Bp0 >= 2 * SUB:
        tb = min(tb, _round_up(pl.cdiv(Bp0, 2), SUB))
    Bp = _round_up(B, tb)                      # pad so the grid divides evenly

    x = cls_hs.astype(jnp.float32)
    if Bp != B:
        x = jnp.pad(x, ((0, Bp - B), (0, 0)))

    grid = (Bp // tb,)
    cost = pl.CostEstimate(
        flops=2 * Bp * HIDDEN * FC1 + 2 * Bp * FC1 * NPAD,
        transcendentals=2 * Bp,
        bytes_accessed=(Bp * HIDDEN * 4 + w1b.size * 2 + w2p.size * 2
                        + b1r.size * 4 + b2p.size * 4 + Bp * NPAD * 4),
    )

    out = pl.pallas_call(
        head_kernel,
        out_shape=jax.ShapeDtypeStruct((Bp, NPAD), jnp.float32),
        grid=grid,
        in_specs=[
            pl.BlockSpec((tb, HIDDEN), lambda i: (i, 0)),     # x: pipelined per batch tile
            pl.BlockSpec((HIDDEN, FC1), lambda i: (0, 0)),    # w1: resident across steps
            pl.BlockSpec((1, FC1), lambda i: (0, 0)),         # b1
            pl.BlockSpec((FC1, NPAD), lambda i: (0, 0)),      # w2 (padded)
            pl.BlockSpec((1, NPAD), lambda i: (0, 0)),        # b2 (padded)
        ],
        out_specs=pl.BlockSpec((tb, NPAD), lambda i: (i, 0)), # lane-dense output slab
        compiler_params=pltpu.CompilerParams(
            dimension_semantics=("parallel",),                # batch axis -> 2 TCs on v7x
        ),
        cost_estimate=cost,
    )(x, w1b, b1r, w2p, b2p)
    return out[:B, :NCLASS]


def backbone_stub(sent_id, mask, emb_table, proj):
    # TODO(synk): full BERT backbone (self-attention stack) not translated;
    # deterministic stand-in: embedding lookup + masked mean pool + tanh projection.
    emb = emb_table[sent_id]                                   # (B, S, HIDDEN)
    m = mask.astype(jnp.float32)[..., None]                    # (B, S, 1)
    pooled = (emb * m).sum(axis=1) / jnp.maximum(m.sum(axis=1), 1.0)
    cls_hs = jnp.tanh(pooled @ proj)                           # (B, HIDDEN)
    return cls_hs


def init_params(key):
    k1, k2, k3, k4, k5, k6 = jax.random.split(key, 6)
    # PyTorch nn.Linear default init: U(-1/sqrt(fan_in), 1/sqrt(fan_in))
    lim1 = 1.0 / jnp.sqrt(HIDDEN)
    lim2 = 1.0 / jnp.sqrt(FC1)
    w1 = jax.random.uniform(k1, (HIDDEN, FC1), jnp.float32, -lim1, lim1)
    b1 = jax.random.uniform(k2, (FC1,), jnp.float32, -lim1, lim1)
    w2 = jax.random.uniform(k3, (FC1, NCLASS), jnp.float32, -lim2, lim2)
    b2 = jax.random.uniform(k4, (NCLASS,), jnp.float32, -lim2, lim2)
    vocab = 64
    emb_table = jax.random.normal(k5, (vocab, HIDDEN), jnp.float32) * 0.02
    proj = jax.random.normal(k6, (HIDDEN, HIDDEN), jnp.float32) * 0.02
    return w1, b1, w2, b2, emb_table, proj


if __name__ == "__main__":
    key = jax.random.PRNGKey(0)
    pkey, ikey, mkey = jax.random.split(key, 3)
    w1, b1, w2, b2, emb_table, proj = init_params(pkey)

    # One-time weight formatting (not part of the per-call path).
    w1b, b1r, w2p, b2p = prepare_head_params(w1, b1, w2, b2)
    jax.block_until_ready((w1b, b1r, w2p, b2p))

    B, S = 8, 16
    sent_id = jax.random.randint(ikey, (B, S), 0, 64, dtype=jnp.int32)
    mask = (jax.random.uniform(mkey, (B, S)) > 0.2).astype(jnp.int32)

    cls_hs = backbone_stub(sent_id, mask, emb_table, proj)        # (B, 768)
    log_probs = classifier_head(cls_hs, w1b, b1r, w2p, b2p)       # (B, 2)
    jax.block_until_ready(log_probs)

    # Reference with the same bf16 quantization of x / w1 / w2 and f32 accumulation.
    xb = cls_hs.astype(jnp.bfloat16)
    w2b = w2.astype(jnp.bfloat16)
    h_ref = jnp.maximum(jnp.dot(xb, w1b, preferred_element_type=jnp.float32) + b1, 0.0)
    logits_ref = jnp.dot(h_ref.astype(jnp.bfloat16), w2b,
                         preferred_element_type=jnp.float32) + b2
    ref = jax.nn.log_softmax(logits_ref, axis=1)

    assert log_probs.shape == (B, NCLASS)
    assert bool(jnp.allclose(jnp.exp(log_probs).sum(axis=1), 1.0, atol=1e-5))
    assert bool(jnp.allclose(log_probs, ref, atol=5e-3, rtol=5e-3))
    print("KERNEL_OK")
</pallas_src>

<mosaic_0001>
module attributes {stable_mosaic.version = 11 : i64} {
  func.func @head_kernel(%arg0: i32, %arg1: memref<8x768xf32, #tpu.memory_space<vmem>>, %arg2: memref<768x512xbf16, #tpu.memory_space<vmem>>, %arg3: memref<1x512xf32, #tpu.memory_space<vmem>>, %arg4: memref<512x128xbf16, #tpu.memory_space<vmem>>, %arg5: memref<1x128xf32, #tpu.memory_space<vmem>>, %arg6: memref<8x128xf32, #tpu.memory_space<vmem>>) attributes {dimension_semantics = [#tpu.dimension_semantics<parallel>], iteration_bounds = array<i64: 1>, scalar_prefetch = 0 : i64, scratch_operands = 0 : i64, tpu.core_type = #tpu.core_type<tc>, window_params = [{transform_indices = @transform_0, window_bounds = array<i64: 8, 768>}, {pipeline_mode = #tpu.pipeline_mode<synchronous>, transform_indices = @transform_1, window_bounds = array<i64: 768, 512>}, {pipeline_mode = #tpu.pipeline_mode<synchronous>, transform_indices = @transform_2, window_bounds = array<i64: 1, 512>}, {pipeline_mode = #tpu.pipeline_mode<synchronous>, transform_indices = @transform_3, window_bounds = array<i64: 512, 128>}, {pipeline_mode = #tpu.pipeline_mode<synchronous>, transform_indices = @transform_4, window_bounds = array<i64: 1, 128>}, {transform_indices = @transform_5, window_bounds = array<i64: 8, 128>}]} {
    %c0 = arith.constant 0 : index
    %c0_0 = arith.constant 0 : index
    %0 = vector.load %arg1[%c0, %c0_0] : memref<8x768xf32, #tpu.memory_space<vmem>>, vector<8x768xf32>
    %1 = arith.truncf %0 : vector<8x768xf32> to vector<8x768xbf16>
    %c0_1 = arith.constant 0 : index
    %c0_2 = arith.constant 0 : index
    %2 = vector.load %arg2[%c0_1, %c0_2] : memref<768x512xbf16, #tpu.memory_space<vmem>>, vector<768x512xbf16>
    %cst = arith.constant dense<0.000000e+00> : vector<8x512xf32>
    %3 = tpu.matmul %1, %2, %cst {dimension_numbers = #tpu.dot_dimension_numbers<[1], [0], [0], [1], [0, 0, 1, 1], [], []>} : vector<8x768xbf16>, vector<768x512xbf16>, vector<8x512xf32> -> vector<8x512xf32>
    %c0_3 = arith.constant 0 : index
    %c0_4 = arith.constant 0 : index
    %4 = vector.load %arg3[%c0_3, %c0_4] : memref<1x512xf32, #tpu.memory_space<vmem>>, vector<1x512xf32>
    %5 = vector.broadcast %4 : vector<1x512xf32> to vector<8x512xf32>
    %6 = arith.addf %3, %5 : vector<8x512xf32>
    %cst_5 = arith.constant 0.000000e+00 : f32
    %7 = vector.broadcast %cst_5 : f32 to vector<8x512xf32>
    %8 = arith.maximumf %6, %7 : vector<8x512xf32>
    %9 = arith.truncf %8 : vector<8x512xf32> to vector<8x512xbf16>
    %c0_6 = arith.constant 0 : index
    %c0_7 = arith.constant 0 : index
    %10 = vector.load %arg4[%c0_6, %c0_7] : memref<512x128xbf16, #tpu.memory_space<vmem>>, vector<512x128xbf16>
    %cst_8 = arith.constant dense<0.000000e+00> : vector<8x128xf32>
    %11 = tpu.matmul %9, %10, %cst_8 {dimension_numbers = #tpu.dot_dimension_numbers<[1], [0], [0], [1], [0, 0, 1, 1], [], []>} : vector<8x512xbf16>, vector<512x128xbf16>, vector<8x128xf32> -> vector<8x128xf32>
    %c0_9 = arith.constant 0 : index
    %c0_10 = arith.constant 0 : index
    %12 = vector.load %arg5[%c0_9, %c0_10] : memref<1x128xf32, #tpu.memory_space<vmem>>, vector<1x128xf32>
    %13 = vector.broadcast %12 : vector<1x128xf32> to vector<8x128xf32>
    %14 = arith.addf %11, %13 : vector<8x128xf32>
    %15 = vector.extract_strided_slice %14 {offsets = [0, 1], sizes = [8, 1], strides = [1, 1]} : vector<8x128xf32> to vector<8x1xf32>
    %16 = vector.extract_strided_slice %14 {offsets = [0, 0], sizes = [8, 1], strides = [1, 1]} : vector<8x128xf32> to vector<8x1xf32>
    %17 = arith.subf %15, %16 : vector<8x1xf32>
    %cst_11 = arith.constant 0.000000e+00 : f32
    %18 = vector.broadcast %cst_11 : f32 to vector<8x1xf32>
    %19 = arith.maximumf %17, %18 : vector<8x1xf32>
    %20 = math.absf %17 : vector<8x1xf32>
    %cst_12 = arith.constant 0.000000e+00 : f32
    %21 = vector.broadcast %cst_12 : f32 to vector<8x1xf32>
    %22 = arith.subf %21, %20 : vector<8x1xf32>
    %23 = math.exp %22 : vector<8x1xf32>
    %cst_13 = arith.constant 1.000000e+00 : f32
    %24 = vector.broadcast %cst_13 : f32 to vector<8x1xf32>
    %25 = arith.addf %24, %23 : vector<8x1xf32>
    %26 = math.log %25 : vector<8x1xf32>
    %27 = arith.addf %19, %26 : vector<8x1xf32>
    %cst_14 = arith.constant 0.000000e+00 : f32
    %28 = vector.broadcast %cst_14 : f32 to vector<8x1xf32>
    %29 = arith.subf %28, %27 : vector<8x1xf32>
    %cst_15 = arith.constant 0.000000e+00 : f32
    %30 = vector.broadcast %cst_15 : f32 to vector<8x1xf32>
    %31 = arith.subf %30, %17 : vector<8x1xf32>
    %cst_16 = arith.constant 0.000000e+00 : f32
    %32 = vector.broadcast %cst_16 : f32 to vector<8x1xf32>
    %33 = arith.maximumf %31, %32 : vector<8x1xf32>
    %34 = math.absf %31 : vector<8x1xf32>
    %cst_17 = arith.constant 0.000000e+00 : f32
    %35 = vector.broadcast %cst_17 : f32 to vector<8x1xf32>
    %36 = arith.subf %35, %34 : vector<8x1xf32>
    %37 = math.exp %36 : vector<8x1xf32>
    %cst_18 = arith.constant 1.000000e+00 : f32
    %38 = vector.broadcast %cst_18 : f32 to vector<8x1xf32>
    %39 = arith.addf %38, %37 : vector<8x1xf32>
    %40 = math.log %39 : vector<8x1xf32>
    %41 = arith.addf %33, %40 : vector<8x1xf32>
    %cst_19 = arith.constant 0.000000e+00 : f32
    %42 = vector.broadcast %cst_19 : f32 to vector<8x1xf32>
    %43 = arith.subf %42, %41 : vector<8x1xf32>
    %44 = tpu.iota {dimensions = array<i32: 1>} : vector<8x128xi32>
    %c0_i32 = arith.constant 0 : i32
    %45 = vector.broadcast %c0_i32 : i32 to vector<8x128xi32>
    %46 = arith.cmpi eq, %44, %45 : vector<8x128xi32>
    %47 = vector.shape_cast %29 : vector<8x1xf32> to vector<8x1xf32>
    %48 = vector.broadcast %47 : vector<8x1xf32> to vector<8x128xf32>
    %49 = vector.shape_cast %43 : vector<8x1xf32> to vector<8x1xf32>
    %50 = vector.broadcast %49 : vector<8x1xf32> to vector<8x128xf32>
    %51 = arith.select %46, %48, %50 : vector<8x128xi1>, vector<8x128xf32>
    %c0_20 = arith.constant 0 : index
    %c0_21 = arith.constant 0 : index
    %52 = vector.load %arg6[%c0_20, %c0_21] : memref<8x128xf32, #tpu.memory_space<vmem>>, vector<8x128xf32>
    tpu.vector_store %arg6[%c0_20, %c0_21], %51 {strides = array<i32>} : memref<8x128xf32, #tpu.memory_space<vmem>>, vector<8x128xf32>,
    return
  }
  func.func @transform_0(%arg0: i32) -> (i32, i32) {
    %c0_i32 = arith.constant 0 : i32
    %c0_i32_0 = arith.constant 0 : i32
    return %arg0, %c0_i32 : i32, i32
  }
  func.func @transform_1(%arg0: i32) -> (i32, i32) {
    %c0_i32 = arith.constant 0 : i32
    %c0_i32_0 = arith.constant 0 : i32
    %c0_i32_1 = arith.constant 0 : i32
    return %c0_i32, %c0_i32_0 : i32, i32
  }
  func.func @transform_2(%arg0: i32) -> (i32, i32) {
    %c0_i32 = arith.constant 0 : i32
    %c0_i32_0 = arith.constant 0 : i32
    %c0_i32_1 = arith.constant 0 : i32
    return %c0_i32, %c0_i32_0 : i32, i32
  }
  func.func @transform_3(%arg0: i32) -> (i32, i32) {
    %c0_i32 = arith.constant 0 : i32
    %c0_i32_0 = arith.constant 0 : i32
    %c0_i32_1 = arith.constant 0 : i32
    return %c0_i32, %c0_i32_0 : i32, i32
  }
  func.func @transform_4(%arg0: i32) -> (i32, i32) {
    %c0_i32 = arith.constant 0 : i32
    %c0_i32_0 = arith.constant 0 : i32
    %c0_i32_1 = arith.constant 0 : i32
    return %c0_i32, %c0_i32_0 : i32, i32
  }
  func.func @transform_5(%arg0: i32) -> (i32, i32) {
    %c0_i32 = arith.constant 0 : i32
    %c0_i32_0 = arith.constant 0 : i32
    return %arg0, %c0_i32 : i32, i32
  }
}

</mosaic_0001>

<bundles_post_ra>
// kernel: classifier_head.1
= control target key start
LH: loop header
LB: loop body
LE: loop exit
PB: predicated region body
PF: predicated region fallthrough
CT: control target
= control target key end

     0   :  { %10 = vsyncpa [#allocation3], 0  ;;  %s2674_s0 = inlined_call_operand.hbm [shape: f32[8,768], index: 0, kind: input, shape index: {}]   ;;  %s2675_s1 = inlined_call_operand.hbm [shape: bf16[768,512], index: 1, kind: input, shape index: {}]   ;;  %s2676_s2 = inlined_call_operand.vmem [shape: f32[1,512], index: 2, kind: input, shape index: {}]   ;;  %s2677_s3 = inlined_call_operand.hbm [shape: bf16[512,128], index: 3, kind: input, shape index: {}]   ;;  %s2678_s4 = inlined_call_operand.vmem [shape: f32[1,128], index: 4, kind: input, shape index: {}]   ;;  %s2679_s5 = inlined_call_operand.vmem [shape: f32[8,128], index: 5, kind: output, shape index: {}]  }
   0x1   :  { %11 = vsyncpa [#allocation5], 0  ;;  %s2588_s18 = smov [#allocation4]   ;;  %s2518_s22 = scalar_lea.hbm %s2675_s1, 24576 }
   0x2   :  { %s27_s19 = sshll.u32 %s2588_s18, 4  ;;  %p2519_p0 = scmp.ne.s32.totalorder %s2675_s1, %s2518_s22  ;;  %s28_s19 = int_to_ptr.vmem [resolvable:$true] %s27_s19 }
   0x3   :  { %p2522_p1 = scmp.lt.u32.totalorder %s2518_s22, %s2675_s1 }
   0x5   :  { %p2524_p2 = pnand %p2522_p1, %p2519_p0 }
   0x7   :  { %2527 = shalt.err (!%p2524_p2)
}
   0x8   :  { %s2528_s27 = scalar_lea.vmem %s28_s19, 24576  ;;  %p2533_p4 = scmp.lt.s32.totalorder %s28_s19, %s28_s19 }
   0x9   :  { %p2529_p3 = scmp.ne.s32.totalorder %s28_s19, %s2528_s27  ;;  %p2534_p5 = scmp.lt.s32.totalorder %s2528_s27, %s2528_s27 }
   0xb   :  { %p2535_p6 = por %p2534_p5, %p2533_p4 }
   0xd   :  { %p2536_p7 = pnand %p2535_p6, %p2529_p3 }
   0xf   :  { %2539 = shalt.err (!%p2536_p7)
}
  0x10   :  { %s2589_s28 = smov 256   ;;  %s2590_s29 = smov 16  }
  0x11   :  { %33 = dma.hbm_to_vmem [thread:$0]  %s2675_s1, 24576, %s28_s19, [#allocation5], %s2589_s28, %s2589_s28, %s2590_s29  }
  0x12   :  { %s2591_s7 = smov [#allocation2]   ;;  %s2592_s9 = smov [#allocation6]  }
  0x13   :  { %s18_s8 = sshll.u32 %s2591_s7, 4  ;;  %s41_s10 = sshll.u32 %s2592_s9, 4  ;;  %s19_s8 = int_to_ptr.vmem [resolvable:$true] %s18_s8  ;;  %s42_s10 = int_to_ptr.vmem [resolvable:$true] %s41_s10 }
  0x14   :  { %s2540_s13 = scalar_lea.hbm %s2674_s0, 768 }
  0x15   :  { %p2541_p8 = scmp.ne.s32.totalorder %s2674_s0, %s2540_s13  ;;  %p2544_p9 = scmp.lt.u32.totalorder %s2540_s13, %s2674_s0 }
  0x17   :  { %p2546_p10 = pnand %p2544_p9, %p2541_p8 }
  0x19   :  { %2549 = shalt.err (!%p2546_p10)
}
  0x1a   :  { %s2550_s1 = scalar_lea.vmem %s19_s8, 768  ;;  %p2555_p12 = scmp.lt.s32.totalorder %s19_s8, %s19_s8 }
  0x1b   :  { %p2551_p11 = scmp.ne.s32.totalorder %s19_s8, %s2550_s1  ;;  %p2556_p13 = scmp.lt.s32.totalorder %s2550_s1, %s2550_s1 }
  0x1d   :  { %p2557_p0 = por %p2556_p13, %p2555_p12 }
  0x1f   :  { %p2558_p1 = pnand %p2557_p0, %p2551_p11 }
  0x21   :  { %2561 = shalt.err (!%p2558_p1)
}
  0x22   :  { %21 = dma.hbm_to_vmem [thread:$0]  %s2674_s0, 768, %s19_s8, [#allocation3]  }
  0x23   :  { %s2562_s22 = scalar_lea.hbm %s2677_s3, 4096 }
  0x24   :  { %p2563_p2 = scmp.ne.s32.totalorder %s2677_s3, %s2562_s22  ;;  %p2566_p3 = scmp.lt.u32.totalorder %s2562_s22, %s2677_s3 }
  0x26   :  { %p2568_p4 = pnand %p2566_p3, %p2563_p2 }
  0x28   :  { %2571 = shalt.err (!%p2568_p4)
}
  0x29   :  { %s2572_s27 = scalar_lea.vmem %s42_s10, 4096  ;;  %p2577_p6 = scmp.lt.s32.totalorder %s42_s10, %s42_s10 }
  0x2a   :  { %p2573_p5 = scmp.ne.s32.totalorder %s42_s10, %s2572_s27  ;;  %p2578_p7 = scmp.lt.s32.totalorder %s2572_s27, %s2572_s27 }
  0x2c   :  { %p2579_p8 = por %p2578_p7, %p2577_p6 }
  0x2e   :  { %p2580_p9 = pnand %p2579_p8, %p2573_p5 }
  0x30   :  { %2583 = shalt.err (!%p2580_p9)
}
  0x31   :  { %s2593_s0 = smov 64   ;;  %s2594_s28 = smov 4  }
  0x32   :  { %47 = dma.hbm_to_vmem [thread:$0]  %s2677_s3, 4096, %s42_s10, [#allocation5], %s2593_s0, %s2593_s0, %s2594_s28  }
  0x33   :  { %2584 = dma.done.wait [#allocation3], 768  }
  0x34   :  { %2585 = vsyncadd [#allocation3], 4294966528 }
  0x35   :  { %2586 = dma.done.wait [#allocation5], 28672  }
  0x36   :  { %2587 = vsyncadd [#allocation5], 4294938624  ;;  %v2190_v0 = vld [vmem:[#allocation4 + $0x4] ss:$16 sps:$4 sm:$0xff]   ;;  %v2192_v1 = vld [vmem:[#allocation4 + $0xc] ss:$16 sps:$4 sm:$0xff]  }
  0x37   :  { %1246 = vmatprep.subr.bf16.mxu0 %v2190_v0  ;;  %v2194_v2 = vld [vmem:[#allocation4] ss:$16 sps:$4 sm:$0xff]   ;;  %v2195_v3 = vld [vmem:[#allocation4 + $0x8] ss:$16 sps:$4 sm:$0xff]   ;;  %1369 = vmatprep.subr.bf16.mxu1 %v2192_v1  ;;  %v2196_v4 = vld [vmem:[#allocation4 + $0x24] ss:$16 sps:$4 sm:$0xff]  }
  0x38   :  { %1247 = vmatpush1.bf16.msra.mxu0 %v2194_v2  ;;  %1370 = vmatpush1.bf16.msra.mxu1 %v2195_v3  ;;  %v2198_v5 = vld [vmem:[#allocation4 + $0x2c] ss:$16 sps:$4 sm:$0xff]   ;;  %v2200_v6 = vld [vmem:[#allocation4 + $0x20] ss:$16 sps:$4 sm:$0xff]   ;;  %v2201_v7 = vld [vmem:[#allocation4 + $0x28] ss:$16 sps:$4 sm:$0xff]  }
  0x39   :  { %1248 = vmatprep.subr.bf16.mxu0 %v2196_v4  ;;  %1371 = vmatprep.subr.bf16.mxu1 %v2198_v5  ;;  %v2202_v8 = vld [vmem:[#allocation4 + $0x44] ss:$16 sps:$4 sm:$0xff]   ;;  %v2204_v9 = vld [vmem:[#allocation4 + $0x4c] ss:$16 sps:$4 sm:$0xff]   ;;  %v2206_v10 = vld [vmem:[#allocation4 + $0x40] ss:$16 sps:$4 sm:$0xff]  }
  0x3a   :  { %v2207_v11 = vld [vmem:[#allocation4 + $0x48] ss:$16 sps:$4 sm:$0xff]   ;;  %v2208_v12 = vld [vmem:[#allocation4 + $0x64] ss:$16 sps:$4 sm:$0xff]   ;;  %v2210_v13 = vld [vmem:[#allocation4 + $0x6c] ss:$16 sps:$4 sm:$0xff]  }
  0x3b   :  { %v2212_v14 = vld [vmem:[#allocation4 + $0x60] ss:$16 sps:$4 sm:$0xff]   ;;  %v2213_v15 = vld [vmem:[#allocation4 + $0x68] ss:$16 sps:$4 sm:$0xff]   ;;  %v2214_v16 = vld [vmem:[#allocation4 + $0x84] ss:$16 sps:$4 sm:$0xff]  }
  0x3c   :  { %1249 = vmatpush1.bf16.msra.mxu0 %v2200_v6  ;;  %1372 = vmatpush1.bf16.msra.mxu1 %v2201_v7  ;;  %v2216_v17 = vld [vmem:[#allocation4 + $0x8c] ss:$16 sps:$4 sm:$0xff]   ;;  %v2218_v18 = vld [vmem:[#allocation4 + $0x80] ss:$16 sps:$4 sm:$0xff]   ;;  %v2219_v19 = vld [vmem:[#allocation4 + $0x88] ss:$16 sps:$4 sm:$0xff]  }
  0x3d   :  { %1250 = vmatprep.subr.bf16.mxu0 %v2202_v8  ;;  %1373 = vmatprep.subr.bf16.mxu1 %v2204_v9  ;;  %v2220_v20 = vld [vmem:[#allocation4 + $0xa4] ss:$16 sps:$4 sm:$0xff]   ;;  %v2222_v21 = vld [vmem:[#allocation4 + $0xac] ss:$16 sps:$4 sm:$0xff]   ;;  %v2224_v22 = vld [vmem:[#allocation4 + $0xa0] ss:$16 sps:$4 sm:$0xff]  }
  0x3e   :  { %v2225_v23 = vld [vmem:[#allocation4 + $0xa8] ss:$16 sps:$4 sm:$0xff]   ;;  %v2226_v24 = vld [vmem:[#allocation4 + $0xc4] ss:$16 sps:$4 sm:$0xff]   ;;  %v2228_v25 = vld [vmem:[#allocation4 + $0xcc] ss:$16 sps:$4 sm:$0xff]  }
  0x3f   :  { %v2230_v26 = vld [vmem:[#allocation4 + $0xc0] ss:$16 sps:$4 sm:$0xff]   ;;  %v2231_v27 = vld [vmem:[#allocation4 + $0xc8] ss:$16 sps:$4 sm:$0xff]   ;;  %v2232_v28 = vld [vmem:[#allocation4 + $0xe4] ss:$16 sps:$4 sm:$0xff]  }
  0x40   :  { %1251 = vmatpush1.bf16.msra.mxu0 %v2206_v10  ;;  %1374 = vmatpush1.bf16.msra.mxu1 %v2207_v11  ;;  %v2234_v29 = vld [vmem:[#allocation4 + $0xec] ss:$16 sps:$4 sm:$0xff]   ;;  %v2236_v30 = vld [vmem:[#allocation4 + $0xe0] ss:$16 sps:$4 sm:$0xff]   ;;  %v2237_v31 = vld [vmem:[#allocation4 + $0xe8] ss:$16 sps:$4 sm:$0xff]  }
  0x41   :  { %1252 = vmatprep.subr.bf16.mxu0 %v2208_v12  ;;  %1375 = vmatprep.subr.bf16.mxu1 %v2210_v13  ;;  %v2238_v32 = vld [vmem:[#allocation4 + $0x104] ss:$16 sps:$4 sm:$0xff]   ;;  %v2240_v33 = vld [vmem:[#allocation4 + $0x10c] ss:$16 sps:$4 sm:$0xff]   ;;  %v2242_v34 = vld [vmem:[#allocation4 + $0x100] ss:$16 sps:$4 sm:$0xff]  }
  0x42   :  { %v2243_v35 = vld [vmem:[#allocation4 + $0x108] ss:$16 sps:$4 sm:$0xff]   ;;  %v2244_v36 = vld [vmem:[#allocation4 + $0x124] ss:$16 sps:$4 sm:$0xff]   ;;  %v2246_v37 = vld [vmem:[#allocation4 + $0x12c] ss:$16 sps:$4 sm:$0xff]  }
  0x43   :  { %v2248_v38 = vld [vmem:[#allocation4 + $0x120] ss:$16 sps:$4 sm:$0xff]   ;;  %v2249_v39 = vld [vmem:[#allocation4 + $0x128] ss:$16 sps:$4 sm:$0xff]   ;;  %v2250_v40 = vld [vmem:[#allocation4 + $0x144] ss:$16 sps:$4 sm:$0xff]  }
  0x44   :  { %1253 = vmatpush1.bf16.msra.mxu0 %v2212_v14  ;;  %1376 = vmatpush1.bf16.msra.mxu1 %v2213_v15  ;;  %v2252_v41 = vld [vmem:[#allocation4 + $0x14c] ss:$16 sps:$4 sm:$0xff]   ;;  %v2254_v42 = vld [vmem:[#allocation4 + $0x140] ss:$16 sps:$4 sm:$0xff]   ;;  %v2255_v43 = vld [vmem:[#allocation4 + $0x148] ss:$16 sps:$4 sm:$0xff]  }
  0x45   :  { %1254 = vmatprep.subr.bf16.mxu0 %v2214_v16  ;;  %1377 = vmatprep.subr.bf16.mxu1 %v2216_v17  ;;  %v2256_v44 = vld [vmem:[#allocation4 + $0x164] ss:$16 sps:$4 sm:$0xff]   ;;  %v2258_v45 = vld [vmem:[#allocation4 + $0x16c] ss:$16 sps:$4 sm:$0xff]   ;;  %v2260_v47 = vld [vmem:[#allocation4 + $0x160] ss:$16 sps:$4 sm:$0xff]  }
  0x46   :  { %v61_v46 = vld [vmem:[#allocation2 + $0x8] sm:$0xff]  ;;  %v2262_v50 = vld [vmem:[#allocation4 + $0x184] ss:$16 sps:$4 sm:$0xff]   ;;  %v2266_v52 = vld [vmem:[#allocation4 + $0x180] ss:$16 sps:$4 sm:$0xff]   ;;  %s2595_s8 = smov 1  }
  0x47   :  { %v67_v48 = vpack.c.bf16 %v61_v46, %v61_v46  ;;  %v2261_v49 = vld [vmem:[#allocation4 + $0x168] ss:$16 sps:$4 sm:$0xff]   ;;  %v2264_v51 = vld [vmem:[#allocation4 + $0x18c] ss:$16 sps:$4 sm:$0xff]   ;;  %v2268_v54 = vld [vmem:[#allocation4 + $0x1a4] ss:$16 sps:$4 sm:$0xff]  }
  0x48   :  { %1255 = vmatpush1.bf16.msra.mxu0 %v2218_v18  ;;  %1378 = vmatpush1.bf16.msra.mxu1 %v2219_v19  ;;  %v2267_v53 = vld [vmem:[#allocation4 + $0x188] ss:$16 sps:$4 sm:$0xff]   ;;  %v2270_v55 = vld [vmem:[#allocation4 + $0x1ac] ss:$16 sps:$4 sm:$0xff]   ;;  %v2272_v56 = vld [vmem:[#allocation4 + $0x1a0] ss:$16 sps:$4 sm:$0xff]  }
  0x49   :  { %1256 = vmatprep.subr.bf16.mxu0 %v2220_v20  ;;  %1379 = vmatprep.subr.bf16.mxu1 %v2222_v21  ;;  %v2273_v57 = vld [vmem:[#allocation4 + $0x1a8] ss:$16 sps:$4 sm:$0xff]   ;;  %v2274_v58 = vld [vmem:[#allocation4 + $0x1c4] ss:$16 sps:$4 sm:$0xff]   ;;  %v2276_v59 = vld [vmem:[#allocation4 + $0x1cc] ss:$16 sps:$4 sm:$0xff]  }
  0x4a   :  { %1278 = vmatprep.mubr.bf16.mxu0 %v67_v48  ;;  %1401 = vmatprep.mubr.bf16.mxu1 %v67_v48  ;;  %v2278_v60 = vld [vmem:[#allocation4 + $0x1c0] ss:$16 sps:$4 sm:$0xff]   ;;  %v2279_v61 = vld [vmem:[#allocation4 + $0x1c8] ss:$16 sps:$4 sm:$0xff]   ;;  %v2280_v62 = vld [vmem:[#allocation4 + $0x1e4] ss:$16 sps:$4 sm:$0xff]  }
  0x4b   :  { %v2282_v63 = vld [vmem:[#allocation4 + $0x1ec] ss:$16 sps:$4 sm:$0xff]   ;;  %v2284_v0 = vld [vmem:[#allocation4 + $0x1e0] ss:$16 sps:$4 sm:$0xff]   ;;  %v2285_v1 = vld [vmem:[#allocation4 + $0x1e8] ss:$16 sps:$4 sm:$0xff]  }
  0x4c   :  { %1257 = vmatpush1.bf16.msra.mxu0 %v2224_v22  ;;  %1380 = vmatpush1.bf16.msra.mxu1 %v2225_v23  ;;  %v60_v2 = vld [vmem:[#allocation2] sm:$0xff]  ;;  %v2291_v4 = vld [vmem:[#allocation4 + $0x20c] ss:$16 sps:$4 sm:$0xff]   ;;  %v2289_v7 = vld [vmem:[#allocation4 + $0x208] ss:$16 sps:$4 sm:$0xff]  }
  0x4d   :  { %1258 = vmatprep.subr.bf16.mxu0 %v2226_v24  ;;  %1381 = vmatprep.subr.bf16.mxu1 %v2228_v25  ;;  %v2288_v3 = vld [vmem:[#allocation4 + $0x204] ss:$16 sps:$4 sm:$0xff]   ;;  %v66_v5 = vpack.c.bf16 %v60_v2, %v60_v2  ;;  %v2286_v6 = vld [vmem:[#allocation4 + $0x200] ss:$16 sps:$4 sm:$0xff]   ;;  %v2297_v9 = vld [vmem:[#allocation4 + $0x22c] ss:$16 sps:$4 sm:$0xff]  }
  0x4e   :  { %v2294_v8 = vld [vmem:[#allocation4 + $0x224] ss:$16 sps:$4 sm:$0xff]   ;;  %v2292_v10 = vld [vmem:[#allocation4 + $0x220] ss:$16 sps:$4 sm:$0xff]   ;;  %v2295_v11 = vld [vmem:[#allocation4 + $0x228] ss:$16 sps:$4 sm:$0xff]  }
  0x4f   :  { %v2300_v12 = vld [vmem:[#allocation4 + $0x244] ss:$16 sps:$4 sm:$0xff]   ;;  %v2303_v13 = vld [vmem:[#allocation4 + $0x24c] ss:$16 sps:$4 sm:$0xff]   ;;  %v2298_v14 = vld [vmem:[#allocation4 + $0x240] ss:$16 sps:$4 sm:$0xff]  }
  0x50   :  { %1259 = vmatpush1.bf16.msra.mxu0 %v2230_v26  ;;  %1382 = vmatpush1.bf16.msra.mxu1 %v2231_v27  ;;  %v2301_v15 = vld [vmem:[#allocation4 + $0x248] ss:$16 sps:$4 sm:$0xff]   ;;  %v2306_v16 = vld [vmem:[#allocation4 + $0x264] ss:$16 sps:$4 sm:$0xff]   ;;  %v2309_v17 = vld [vmem:[#allocation4 + $0x26c] ss:$16 sps:$4 sm:$0xff]  }
  0x51   :  { %1260 = vmatprep.subr.bf16.mxu0 %v2232_v28  ;;  %1383 = vmatprep.subr.bf16.mxu1 %v2234_v29  ;;  %v2304_v18 = vld [vmem:[#allocation4 + $0x260] ss:$16 sps:$4 sm:$0xff]   ;;  %v2307_v19 = vld [vmem:[#allocation4 + $0x268] ss:$16 sps:$4 sm:$0xff]   ;;  %v2312_v20 = vld [vmem:[#allocation4 + $0x284] ss:$16 sps:$4 sm:$0xff]  }
  0x52   :  { %v2315_v21 = vld [vmem:[#allocation4 + $0x28c] ss:$16 sps:$4 sm:$0xff]   ;;  %v2310_v22 = vld [vmem:[#allocation4 + $0x280] ss:$16 sps:$4 sm:$0xff]   ;;  %v2313_v23 = vld [vmem:[#allocation4 + $0x288] ss:$16 sps:$4 sm:$0xff]  }
  0x53   :  { %v2318_v24 = vld [vmem:[#allocation4 + $0x2a4] ss:$16 sps:$4 sm:$0xff]   ;;  %v2321_v25 = vld [vmem:[#allocation4 + $0x2ac] ss:$16 sps:$4 sm:$0xff]   ;;  %v2316_v26 = vld [vmem:[#allocation4 + $0x2a0] ss:$16 sps:$4 sm:$0xff]  }
  0x54   :  { %1261 = vmatpush1.bf16.msra.mxu0 %v2236_v30  ;;  %1384 = vmatpush1.bf16.msra.mxu1 %v2237_v31  ;;  %v2319_v27 = vld [vmem:[#allocation4 + $0x2a8] ss:$16 sps:$4 sm:$0xff]   ;;  %v2324_v28 = vld [vmem:[#allocation4 + $0x2c4] ss:$16 sps:$4 sm:$0xff]   ;;  %v2327_v29 = vld [vmem:[#allocation4 + $0x2cc] ss:$16 sps:$4 sm:$0xff]  }
  0x55   :  { %1262 = vmatprep.subr.bf16.mxu0 %v2238_v32  ;;  %1385 = vmatprep.subr.bf16.mxu1 %v2240_v33  ;;  %v63_v30 = vld [vmem:[#allocation2 + $0x18] sm:$0xff]  ;;  %v2322_v31 = vld [vmem:[#allocation4 + $0x2c0] ss:$16 sps:$4 sm:$0xff]   ;;  %v2348_v46 = vld [vmem:[#allocation4 + $0x344] ss:$16 sps:$4 sm:$0xff]  }
  0x56   :  { %v69_v32 = vpack.c.bf16 %v63_v30, %v63_v30  ;;  %v2325_v33 = vld [vmem:[#allocation4 + $0x2c8] ss:$16 sps:$4 sm:$0xff]   ;;  %v2346_v48 = vld [vmem:[#allocation4 + $0x340] ss:$16 sps:$4 sm:$0xff]   ;;  %v2378_v2 = vld [vmem:[#allocation4 + $0x3e4] ss:$16 sps:$4 sm:$0xff]  }
  0x57   :  { %v2414_v30 = vld [vmem:[#allocation4 + $0x4a4] ss:$16 sps:$4 sm:$0xff]  }
  0x58   :  { %1263 = vmatpush1.bf16.msra.mxu0 %v2242_v34  ;;  %1386 = vmatpush1.bf16.msra.mxu1 %v2243_v35  ;;  %v2330_v34 = vld [vmem:[#allocation4 + $0x2e4] ss:$16 sps:$4 sm:$0xff]   ;;  %v2333_v35 = vld [vmem:[#allocation4 + $0x2ec] ss:$16 sps:$4 sm:$0xff]  }
  0x59   :  { %1264 = vmatprep.subr.bf16.mxu0 %v2244_v36  ;;  %1387 = vmatprep.subr.bf16.mxu1 %v2246_v37  ;;  %v2328_v36 = vld [vmem:[#allocation4 + $0x2e0] ss:$16 sps:$4 sm:$0xff]   ;;  %v2331_v37 = vld [vmem:[#allocation4 + $0x2e8] ss:$16 sps:$4 sm:$0xff]  }
  0x5c   :  { %1265 = vmatpush1.bf16.msra.mxu0 %v2248_v38  ;;  %1388 = vmatpush1.bf16.msra.mxu1 %v2249_v39  ;;  %v2336_v38 = vld [vmem:[#allocation4 + $0x304] ss:$16 sps:$4 sm:$0xff]   ;;  %v2339_v39 = vld [vmem:[#allocation4 + $0x30c] ss:$16 sps:$4 sm:$0xff]  }
  0x5d   :  { %1266 = vmatprep.subr.bf16.mxu0 %v2250_v40  ;;  %1389 = vmatprep.subr.bf16.mxu1 %v2252_v41  ;;  %v2334_v40 = vld [vmem:[#allocation4 + $0x300] ss:$16 sps:$4 sm:$0xff]   ;;  %v2337_v41 = vld [vmem:[#allocation4 + $0x308] ss:$16 sps:$4 sm:$0xff]  }
  0x60   :  { %1267 = vmatpush1.bf16.msra.mxu0 %v2254_v42  ;;  %1390 = vmatpush1.bf16.msra.mxu1 %v2255_v43  ;;  %v2342_v42 = vld [vmem:[#allocation4 + $0x324] ss:$16 sps:$4 sm:$0xff]   ;;  %v2345_v43 = vld [vmem:[#allocation4 + $0x32c] ss:$16 sps:$4 sm:$0xff]  }
  0x61   :  { %1268 = vmatprep.subr.bf16.mxu0 %v2256_v44  ;;  %1391 = vmatprep.subr.bf16.mxu1 %v2258_v45  ;;  %v2340_v44 = vld [vmem:[#allocation4 + $0x320] ss:$16 sps:$4 sm:$0xff]   ;;  %v2343_v45 = vld [vmem:[#allocation4 + $0x328] ss:$16 sps:$4 sm:$0xff]  }
  0x64   :  { %1269 = vmatpush1.bf16.msra.mxu0 %v2260_v47  ;;  %1392 = vmatpush1.bf16.msra.mxu1 %v2261_v49  ;;  %v2351_v47 = vld [vmem:[#allocation4 + $0x34c] ss:$16 sps:$4 sm:$0xff]   ;;  %v2349_v49 = vld [vmem:[#allocation4 + $0x348] ss:$16 sps:$4 sm:$0xff]  }
  0x65   :  { %1270 = vmatprep.subr.bf16.mxu0 %v2262_v50  ;;  %1393 = vmatprep.subr.bf16.mxu1 %v2264_v51  ;;  %v2354_v50 = vld [vmem:[#allocation4 + $0x364] ss:$16 sps:$4 sm:$0xff]   ;;  %v2357_v51 = vld [vmem:[#allocation4 + $0x36c] ss:$16 sps:$4 sm:$0xff]  }
  0x68   :  { %1271 = vmatpush1.bf16.msra.mxu0 %v2266_v52  ;;  %1394 = vmatpush1.bf16.msra.mxu1 %v2267_v53  ;;  %v2352_v52 = vld [vmem:[#allocation4 + $0x360] ss:$16 sps:$4 sm:$0xff]   ;;  %v2355_v53 = vld [vmem:[#allocation4 + $0x368] ss:$16 sps:$4 sm:$0xff]  }
  0x69   :  { %1272 = vmatprep.subr.bf16.mxu0 %v2268_v54  ;;  %1395 = vmatprep.subr.bf16.mxu1 %v2270_v55  ;;  %v2360_v54 = vld [vmem:[#allocation4 + $0x384] ss:$16 sps:$4 sm:$0xff]   ;;  %v2363_v55 = vld [vmem:[#allocation4 + $0x38c] ss:$16 sps:$4 sm:$0xff]  }
  0x6c   :  { %1273 = vmatpush1.bf16.msra.mxu0 %v2272_v56  ;;  %1396 = vmatpush1.bf16.msra.mxu1 %v2273_v57  ;;  %v2358_v56 = vld [vmem:[#allocation4 + $0x380] ss:$16 sps:$4 sm:$0xff]   ;;  %v2361_v57 = vld [vmem:[#allocation4 + $0x388] ss:$16 sps:$4 sm:$0xff]  }
  0x6d   :  { %1274 = vmatprep.subr.bf16.mxu0 %v2274_v58  ;;  %1397 = vmatprep.subr.bf16.mxu1 %v2276_v59  ;;  %v2366_v58 = vld [vmem:[#allocation4 + $0x3a4] ss:$16 sps:$4 sm:$0xff]   ;;  %v2369_v59 = vld [vmem:[#allocation4 + $0x3ac] ss:$16 sps:$4 sm:$0xff]  }
  0x70   :  { %1275 = vmatpush1.bf16.msra.mxu0 %v2278_v60  ;;  %1398 = vmatpush1.bf16.msra.mxu1 %v2279_v61  ;;  %v2364_v60 = vld [vmem:[#allocation4 + $0x3a0] ss:$16 sps:$4 sm:$0xff]   ;;  %v2367_v61 = vld [vmem:[#allocation4 + $0x3a8] ss:$16 sps:$4 sm:$0xff]  }
  0x71   :  { %1276 = vmatprep.subr.bf16.mxu0 %v2280_v62  ;;  %1399 = vmatprep.subr.bf16.mxu1 %v2282_v63  ;;  %v2372_v62 = vld [vmem:[#allocation4 + $0x3c4] ss:$16 sps:$4 sm:$0xff]   ;;  %v2375_v63 = vld [vmem:[#allocation4 + $0x3cc] ss:$16 sps:$4 sm:$0xff]  }
  0x74   :  { %1277 = vmatpush1.bf16.msra.mxu0 %v2284_v0  ;;  %1400 = vmatpush1.bf16.msra.mxu1 %v2285_v1  ;;  %v2370_v0 = vld [vmem:[#allocation4 + $0x3c0] ss:$16 sps:$4 sm:$0xff]   ;;  %v2373_v1 = vld [vmem:[#allocation4 + $0x3c8] ss:$16 sps:$4 sm:$0xff]  }
  0x75   :  { %1287 = vmatprep.subr.bf16.mxu0 %v2288_v3  ;;  %1410 = vmatprep.subr.bf16.mxu1 %v2291_v4  ;;  %v2381_v3 = vld [vmem:[#allocation4 + $0x3ec] ss:$16 sps:$4 sm:$0xff]   ;;  %v2376_v4 = vld [vmem:[#allocation4 + $0x3e0] ss:$16 sps:$4 sm:$0xff]  }
  0x77   :  { %1279 = vmatmul.mubr.bf16.vlgmr.msra.gmra.mrb[0].mxu0 %v66_v5  ;;  %1402 = vmatmul.mubr.bf16.vlgmr.msra.gmra.mrb[0].mxu1 %v66_v5  ;;  %v2379_v5 = vld [vmem:[#allocation4 + $0x3e8] ss:$16 sps:$4 sm:$0xff]  }
  0x78   :  { %1288 = vmatpush1.bf16.msra.mxu0 %v2286_v6  ;;  %1411 = vmatpush1.bf16.msra.mxu1 %v2289_v7  ;;  %v2384_v6 = vld [vmem:[#allocation4 + $0x404] ss:$16 sps:$4 sm:$0xff]  }
  0x79   :  { %1289 = vmatprep.subr.bf16.mxu0 %v2294_v8  ;;  %1412 = vmatprep.subr.bf16.mxu1 %v2297_v9  ;;  %v62_v7 = vld [vmem:[#allocation2 + $0x10] sm:$0xff]  ;;  %v2387_v8 = vld [vmem:[#allocation4 + $0x40c] ss:$16 sps:$4 sm:$0xff]  }
  0x7a   :  { %1319 = vmatprep.mubr.bf16.mxu0 %v69_v32  ;;  %1442 = vmatprep.mubr.bf16.mxu1 %v69_v32  ;;  %v2382_v9 = vld [vmem:[#allocation4 + $0x400] ss:$16 sps:$4 sm:$0xff]  }
  0x7b   :  { %v2412_v32 = vld [vmem:[#allocation4 + $0x4a0] ss:$16 sps:$4 sm:$0xff]  }
  0x7c   :  { %1290 = vmatpush1.bf16.msra.mxu0 %v2292_v10  ;;  %1413 = vmatpush1.bf16.msra.mxu1 %v2295_v11  ;;  %v68_v10 = vpack.c.bf16 %v62_v7, %v62_v7  ;;  %v2385_v11 = vld [vmem:[#allocation4 + $0x408] ss:$16 sps:$4 sm:$0xff]   ;;  %v2477_v7 = vld [vmem:[#allocation4 + $0x5ec] ss:$16 sps:$4 sm:$0xff]  }
  0x7d   :  { %1291 = vmatprep.subr.bf16.mxu0 %v2300_v12  ;;  %1414 = vmatprep.subr.bf16.mxu1 %v2303_v13  ;;  %v2390_v12 = vld [vmem:[#allocation4 + $0x424] ss:$16 sps:$4 sm:$0xff]   ;;  %v2393_v13 = vld [vmem:[#allocation4 + $0x42c] ss:$16 sps:$4 sm:$0xff]  }
  0x80   :  { %1292 = vmatpush1.bf16.msra.mxu0 %v2298_v14  ;;  %1415 = vmatpush1.bf16.msra.mxu1 %v2301_v15  ;;  %v65_v14 = vld [vmem:[#allocation2 + $0x28] sm:$0xff]  ;;  %v2388_v15 = vld [vmem:[#allocation4 + $0x420] ss:$16 sps:$4 sm:$0xff]  }
  0x81   :  { %1293 = vmatprep.subr.bf16.mxu0 %v2306_v16  ;;  %1416 = vmatprep.subr.bf16.mxu1 %v2309_v17  ;;  %v71_v16 = vpack.c.bf16 %v65_v14, %v65_v14  ;;  %v2391_v17 = vld [vmem:[#allocation4 + $0x428] ss:$16 sps:$4 sm:$0xff]   ;;  %v2480_v14 = vld [vmem:[#allocation6] sm:$0xff]  }
  0x84   :  { %1294 = vmatpush1.bf16.msra.mxu0 %v2304_v18  ;;  %1417 = vmatpush1.bf16.msra.mxu1 %v2307_v19  ;;  %v2396_v18 = vld [vmem:[#allocation4 + $0x444] ss:$16 sps:$4 sm:$0xff]   ;;  %v2399_v19 = vld [vmem:[#allocation4 + $0x44c] ss:$16 sps:$4 sm:$0xff]  }
  0x85   :  { %1295 = vmatprep.subr.bf16.mxu0 %v2312_v20  ;;  %1418 = vmatprep.subr.bf16.mxu1 %v2315_v21  ;;  %v2394_v20 = vld [vmem:[#allocation4 + $0x440] ss:$16 sps:$4 sm:$0xff]   ;;  %v2397_v21 = vld [vmem:[#allocation4 + $0x448] ss:$16 sps:$4 sm:$0xff]  }
  0x88   :  { %1296 = vmatpush1.bf16.msra.mxu0 %v2310_v22  ;;  %1419 = vmatpush1.bf16.msra.mxu1 %v2313_v23  ;;  %v2402_v22 = vld [vmem:[#allocation4 + $0x464] ss:$16 sps:$4 sm:$0xff]   ;;  %v2405_v23 = vld [vmem:[#allocation4 + $0x46c] ss:$16 sps:$4 sm:$0xff]  }
  0x89   :  { %1297 = vmatprep.subr.bf16.mxu0 %v2318_v24  ;;  %1420 = vmatprep.subr.bf16.mxu1 %v2321_v25  ;;  %v2400_v24 = vld [vmem:[#allocation4 + $0x460] ss:$16 sps:$4 sm:$0xff]   ;;  %v2403_v25 = vld [vmem:[#allocation4 + $0x468] ss:$16 sps:$4 sm:$0xff]  }
  0x8c   :  { %1298 = vmatpush1.bf16.msra.mxu0 %v2316_v26  ;;  %1421 = vmatpush1.bf16.msra.mxu1 %v2319_v27  ;;  %v2408_v26 = vld [vmem:[#allocation4 + $0x484] ss:$16 sps:$4 sm:$0xff]   ;;  %v2411_v27 = vld [vmem:[#allocation4 + $0x48c] ss:$16 sps:$4 sm:$0xff]  }
  0x8d   :  { %1299 = vmatprep.subr.bf16.mxu0 %v2324_v28  ;;  %1422 = vmatprep.subr.bf16.mxu1 %v2327_v29  ;;  %v2406_v28 = vld [vmem:[#allocation4 + $0x480] ss:$16 sps:$4 sm:$0xff]   ;;  %v2409_v29 = vld [vmem:[#allocation4 + $0x488] ss:$16 sps:$4 sm:$0xff]  }
  0x90   :  { %1300 = vmatpush1.bf16.msra.mxu0 %v2322_v31  ;;  %1423 = vmatpush1.bf16.msra.mxu1 %v2325_v33  ;;  %v2417_v31 = vld [vmem:[#allocation4 + $0x4ac] ss:$16 sps:$4 sm:$0xff]   ;;  %v2415_v33 = vld [vmem:[#allocation4 + $0x4a8] ss:$16 sps:$4 sm:$0xff]  }
  0x91   :  { %1301 = vmatprep.subr.bf16.mxu0 %v2330_v34  ;;  %1424 = vmatprep.subr.bf16.mxu1 %v2333_v35  ;;  %v2420_v34 = vld [vmem:[#allocation4 + $0x4c4] ss:$16 sps:$4 sm:$0xff]   ;;  %v2423_v35 = vld [vmem:[#allocation4 + $0x4cc] ss:$16 sps:$4 sm:$0xff]  }
  0x94   :  { %1302 = vmatpush1.bf16.msra.mxu0 %v2328_v36  ;;  %1425 = vmatpush1.bf16.msra.mxu1 %v2331_v37  ;;  %v2418_v36 = vld [vmem:[#allocation4 + $0x4c0] ss:$16 sps:$4 sm:$0xff]   ;;  %v2421_v37 = vld [vmem:[#allocation4 + $0x4c8] ss:$16 sps:$4 sm:$0xff]  }
  0x95   :  { %1303 = vmatprep.subr.bf16.mxu0 %v2336_v38  ;;  %1426 = vmatprep.subr.bf16.mxu1 %v2339_v39  ;;  %v2426_v38 = vld [vmem:[#allocation4 + $0x4e4] ss:$16 sps:$4 sm:$0xff]   ;;  %v2429_v39 = vld [vmem:[#allocation4 + $0x4ec] ss:$16 sps:$4 sm:$0xff]  }
  0x98   :  { %1304 = vmatpush1.bf16.msra.mxu0 %v2334_v40  ;;  %1427 = vmatpush1.bf16.msra.mxu1 %v2337_v41  ;;  %v2424_v40 = vld [vmem:[#allocation4 + $0x4e0] ss:$16 sps:$4 sm:$0xff]   ;;  %v2427_v41 = vld [vmem:[#allocation4 + $0x4e8] ss:$16 sps:$4 sm:$0xff]  }
  0x99   :  { %1305 = vmatprep.subr.bf16.mxu0 %v2342_v42  ;;  %1428 = vmatprep.subr.bf16.mxu1 %v2345_v43  ;;  %v2432_v42 = vld [vmem:[#allocation4 + $0x504] ss:$16 sps:$4 sm:$0xff]   ;;  %v2435_v43 = vld [vmem:[#allocation4 + $0x50c] ss:$16 sps:$4 sm:$0xff]  }
  0x9c   :  { %1306 = vmatpush1.bf16.msra.mxu0 %v2340_v44  ;;  %1429 = vmatpush1.bf16.msra.mxu1 %v2343_v45  ;;  %v2430_v44 = vld [vmem:[#allocation4 + $0x500] ss:$16 sps:$4 sm:$0xff]   ;;  %v2433_v45 = vld [vmem:[#allocation4 + $0x508] ss:$16 sps:$4 sm:$0xff]  }
  0x9d   :  { %1307 = vmatprep.subr.bf16.mxu0 %v2348_v46  ;;  %1430 = vmatprep.subr.bf16.mxu1 %v2351_v47  ;;  %v2438_v46 = vld [vmem:[#allocation4 + $0x524] ss:$16 sps:$4 sm:$0xff]   ;;  %v2441_v47 = vld [vmem:[#allocation4 + $0x52c] ss:$16 sps:$4 sm:$0xff]  }
  0xa0   :  { %1308 = vmatpush1.bf16.msra.mxu0 %v2346_v48  ;;  %1431 = vmatpush1.bf16.msra.mxu1 %v2349_v49  ;;  %v2436_v48 = vld [vmem:[#allocation4 + $0x520] ss:$16 sps:$4 sm:$0xff]   ;;  %v2439_v49 = vld [vmem:[#allocation4 + $0x528] ss:$16 sps:$4 sm:$0xff]  }
  0xa1   :  { %1309 = vmatprep.subr.bf16.mxu0 %v2354_v50  ;;  %1432 = vmatprep.subr.bf16.mxu1 %v2357_v51  ;;  %v2444_v50 = vld [vmem:[#allocation4 + $0x544] ss:$16 sps:$4 sm:$0xff]   ;;  %v2447_v51 = vld [vmem:[#allocation4 + $0x54c] ss:$16 sps:$4 sm:$0xff]  }
  0xa4   :  { %1310 = vmatpush1.bf16.msra.mxu0 %v2352_v52  ;;  %1433 = vmatpush1.bf16.msra.mxu1 %v2355_v53  ;;  %v2442_v52 = vld [vmem:[#allocation4 + $0x540] ss:$16 sps:$4 sm:$0xff]   ;;  %v2445_v53 = vld [vmem:[#allocation4 + $0x548] ss:$16 sps:$4 sm:$0xff]  }
  0xa5   :  { %1311 = vmatprep.subr.bf16.mxu0 %v2360_v54  ;;  %1434 = vmatprep.subr.bf16.mxu1 %v2363_v55  ;;  %v2450_v54 = vld [vmem:[#allocation4 + $0x564] ss:$16 sps:$4 sm:$0xff]   ;;  %v2453_v55 = vld [vmem:[#allocation4 + $0x56c] ss:$16 sps:$4 sm:$0xff]  }
  0xa8   :  { %1312 = vmatpush1.bf16.msra.mxu0 %v2358_v56  ;;  %1435 = vmatpush1.bf16.msra.mxu1 %v2361_v57  ;;  %v2448_v56 = vld [vmem:[#allocation4 + $0x560] ss:$16 sps:$4 sm:$0xff]   ;;  %v2451_v57 = vld [vmem:[#allocation4 + $0x568] ss:$16 sps:$4 sm:$0xff]  }
  0xa9   :  { %1313 = vmatprep.subr.bf16.mxu0 %v2366_v58  ;;  %1436 = vmatprep.subr.bf16.mxu1 %v2369_v59  ;;  %v2456_v58 = vld [vmem:[#allocation4 + $0x584] ss:$16 sps:$4 sm:$0xff]   ;;  %v2459_v59 = vld [vmem:[#allocation4 + $0x58c] ss:$16 sps:$4 sm:$0xff]  }
  0xac   :  { %1314 = vmatpush1.bf16.msra.mxu0 %v2364_v60  ;;  %1437 = vmatpush1.bf16.msra.mxu1 %v2367_v61  ;;  %v2454_v60 = vld [vmem:[#allocation4 + $0x580] ss:$16 sps:$4 sm:$0xff]   ;;  %v2457_v61 = vld [vmem:[#allocation4 + $0x588] ss:$16 sps:$4 sm:$0xff]  }
  0xad   :  { %1315 = vmatprep.subr.bf16.mxu0 %v2372_v62  ;;  %1438 = vmatprep.subr.bf16.mxu1 %v2375_v63  ;;  %v2462_v62 = vld [vmem:[#allocation4 + $0x5a4] ss:$16 sps:$4 sm:$0xff]   ;;  %v2465_v63 = vld [vmem:[#allocation4 + $0x5ac] ss:$16 sps:$4 sm:$0xff]  }
  0xb0   :  { %1316 = vmatpush1.bf16.msra.mxu0 %v2370_v0  ;;  %1439 = vmatpush1.bf16.msra.mxu1 %v2373_v1  ;;  %v2460_v0 = vld [vmem:[#allocation4 + $0x5a0] ss:$16 sps:$4 sm:$0xff]   ;;  %v2463_v1 = vld [vmem:[#allocation4 + $0x5a8] ss:$16 sps:$4 sm:$0xff]  }
  0xb1   :  { %1317 = vmatprep.subr.bf16.mxu0 %v2378_v2  ;;  %1440 = vmatprep.subr.bf16.mxu1 %v2381_v3  ;;  %v2468_v2 = vld [vmem:[#allocation4 + $0x5c4] ss:$16 sps:$4 sm:$0xff]   ;;  %v2471_v3 = vld [vmem:[#allocation4 + $0x5cc] ss:$16 sps:$4 sm:$0xff]  }
  0xb4   :  { %1318 = vmatpush1.bf16.msra.mxu0 %v2376_v4  ;;  %1441 = vmatpush1.bf16.msra.mxu1 %v2379_v5  ;;  %v2466_v4 = vld [vmem:[#allocation4 + $0x5c0] ss:$16 sps:$4 sm:$0xff]   ;;  %v2469_v5 = vld [vmem:[#allocation4 + $0x5c8] ss:$16 sps:$4 sm:$0xff]  }
  0xb5   :  { %1328 = vmatprep.subr.bf16.mxu0 %v2384_v6  ;;  %1451 = vmatprep.subr.bf16.mxu1 %v2387_v8  ;;  %v2474_v6 = vld [vmem:[#allocation4 + $0x5e4] ss:$16 sps:$4 sm:$0xff]   ;;  %v2472_v8 = vld [vmem:[#allocation4 + $0x5e0] ss:$16 sps:$4 sm:$0xff]  }
  0xb7   :  { %1320 = vmatmul.mubr.bf16.vlgmr.msra.gmra.mrb[0].mxu0 %v68_v10  ;;  %1443 = vmatmul.mubr.bf16.vlgmr.msra.gmra.mrb[0].mxu1 %v68_v10  ;;  %v64_v10 = vld [vmem:[#allocation2 + $0x20] sm:$0xff] }
  0xb8   :  { %1329 = vmatpush1.bf16.msra.mxu0 %v2382_v9  ;;  %1452 = vmatpush1.bf16.msra.mxu1 %v2385_v11  ;;  %v2475_v9 = vld [vmem:[#allocation4 + $0x5e8] ss:$16 sps:$4 sm:$0xff]   ;;  %v2478_v11 = vld [vmem:[#allocation6 + $0x40] sm:$0xff]  }
  0xb9   :  { %1330 = vmatprep.subr.bf16.mxu0 %v2390_v12  ;;  %1453 = vmatprep.subr.bf16.mxu1 %v2393_v13  ;;  %v2479_v12 = vld [vmem:[#allocation6 + $0xc0] sm:$0xff]   ;;  %v70_v13 = vpack.c.bf16 %v64_v10, %v64_v10 }
  0xba   :  { %1360 = vmatprep.mubr.bf16.mxu0 %v71_v16  ;;  %1483 = vmatprep.mubr.bf16.mxu1 %v71_v16  ;;  %v2482_v16 = vld [vmem:[#allocation6 + $0x48] sm:$0xff]  }
  0xbc   :  { %1331 = vmatpush1.bf16.msra.mxu0 %v2388_v15  ;;  %1454 = vmatpush1.bf16.msra.mxu1 %v2391_v17  ;;  %v2481_v15 = vld [vmem:[#allocation6 + $0x80] sm:$0xff]   ;;  %v2483_v17 = vld [vmem:[#allocation6 + $0xc8] sm:$0xff]  }
  0xbd   :  { %1332 = vmatprep.subr.bf16.mxu0 %v2396_v18  ;;  %1455 = vmatprep.subr.bf16.mxu1 %v2399_v19  ;;  %v2484_v18 = vld [vmem:[#allocation6 + $0x8] sm:$0xff]  }
  0xbe   :  { %v2485_v19 = vld [vmem:[#allocation6 + $0x88] sm:$0xff]  }
  0xc0   :  { %1333 = vmatpush1.bf16.msra.mxu0 %v2394_v20  ;;  %1456 = vmatpush1.bf16.msra.mxu1 %v2397_v21  ;;  %v2486_v20 = vld [vmem:[#allocation6 + $0x50] sm:$0xff]  }
  0xc1   :  { %1334 = vmatprep.subr.bf16.mxu0 %v2402_v22  ;;  %1457 = vmatprep.subr.bf16.mxu1 %v2405_v23  ;;  %v2487_v21 = vld [vmem:[#allocation6 + $0xd0] sm:$0xff]  }
  0xc2   :  { %v2488_v22 = vld [vmem:[#allocation6 + $0x10] sm:$0xff]  }
  0xc3   :  { %v2489_v23 = vld [vmem:[#allocation6 + $0x90] sm:$0xff]  }
  0xc4   :  { %1335 = vmatpush1.bf16.msra.mxu0 %v2400_v24  ;;  %1458 = vmatpush1.bf16.msra.mxu1 %v2403_v25  ;;  %v2490_v24 = vld [vmem:[#allocation6 + $0x58] sm:$0xff]  }
  0xc5   :  { %1336 = vmatprep.subr.bf16.mxu0 %v2408_v26  ;;  %1459 = vmatprep.subr.bf16.mxu1 %v2411_v27  ;;  %v2491_v25 = vld [vmem:[#allocation6 + $0xd8] sm:$0xff]  }
  0xc6   :  { %v2492_v26 = vld [vmem:[#allocation6 + $0x18] sm:$0xff]  }
  0xc7   :  { %v2493_v27 = vld [vmem:[#allocation6 + $0x98] sm:$0xff]  }
  0xc8   :  { %1337 = vmatpush1.bf16.msra.mxu0 %v2406_v28  ;;  %1460 = vmatpush1.bf16.msra.mxu1 %v2409_v29  ;;  %v2494_v28 = vld [vmem:[#allocation6 + $0x60] sm:$0xff]  }
  0xc9   :  { %1338 = vmatprep.subr.bf16.mxu0 %v2414_v30  ;;  %1461 = vmatprep.subr.bf16.mxu1 %v2417_v31  ;;  %v2495_v29 = vld [vmem:[#allocation6 + $0xe0] sm:$0xff]  }
  0xca   :  { %v2496_v30 = vld [vmem:[#allocation6 + $0x20] sm:$0xff]  }
  0xcb   :  { %v2497_v31 = vld [vmem:[#allocation6 + $0xa0] sm:$0xff]  }
  0xcc   :  { %1339 = vmatpush1.bf16.msra.mxu0 %v2412_v32  ;;  %1462 = vmatpush1.bf16.msra.mxu1 %v2415_v33  ;;  %v2498_v32 = vld [vmem:[#allocation6 + $0x68] sm:$0xff]  }
  0xcd   :  { %1340 = vmatprep.subr.bf16.mxu0 %v2420_v34  ;;  %1463 = vmatprep.subr.bf16.mxu1 %v2423_v35  ;;  %v2499_v33 = vld [vmem:[#allocation6 + $0xe8] sm:$0xff]  }
  0xce   :  { %v2500_v34 = vld [vmem:[#allocation6 + $0x28] sm:$0xff]  }
  0xcf   :  { %v2501_v35 = vld [vmem:[#allocation6 + $0xa8] sm:$0xff]  }
  0xd0   :  { %1341 = vmatpush1.bf16.msra.mxu0 %v2418_v36  ;;  %1464 = vmatpush1.bf16.msra.mxu1 %v2421_v37  ;;  %v2502_v36 = vld [vmem:[#allocation6 + $0x70] sm:$0xff]  }
  0xd1   :  { %1342 = vmatprep.subr.bf16.mxu0 %v2426_v38  ;;  %1465 = vmatprep.subr.bf16.mxu1 %v2429_v39  ;;  %v2503_v37 = vld [vmem:[#allocation6 + $0xf0] sm:$0xff]  }
  0xd2   :  { %v2504_v38 = vld [vmem:[#allocation6 + $0x30] sm:$0xff]  }
  0xd3   :  { %v2505_v39 = vld [vmem:[#allocation6 + $0xb0] sm:$0xff]  }
  0xd4   :  { %1343 = vmatpush1.bf16.msra.mxu0 %v2424_v40  ;;  %1466 = vmatpush1.bf16.msra.mxu1 %v2427_v41  ;;  %v2506_v40 = vld [vmem:[#allocation6 + $0x78] sm:$0xff]  }
  0xd5   :  { %1344 = vmatprep.subr.bf16.mxu0 %v2432_v42  ;;  %1467 = vmatprep.subr.bf16.mxu1 %v2435_v43  ;;  %v2507_v41 = vld [vmem:[#allocation6 + $0xf8] sm:$0xff]  }
  0xd6   :  { %v2508_v42 = vld [vmem:[#allocation6 + $0x38] sm:$0xff]  }
  0xd7   :  { %v2509_v43 = vld [vmem:[#allocation6 + $0xb8] sm:$0xff]  }
  0xd8   :  { %1345 = vmatpush1.bf16.msra.mxu0 %v2430_v44  ;;  %1468 = vmatpush1.bf16.msra.mxu1 %v2433_v45  ;;  %v266_v44 = vlaneseq }
  0xd9   :  { %1346 = vmatprep.subr.bf16.mxu0 %v2438_v46  ;;  %1469 = vmatprep.subr.bf16.mxu1 %v2441_v47 }
  0xda   :  { %v267_v45 = vshrl.u32 %v266_v44, 7 }
  0xdc   :  { %1347 = vmatpush1.bf16.msra.mxu0 %v2436_v48  ;;  %1470 = vmatpush1.bf16.msra.mxu1 %v2439_v49  ;;  %v268_v46 = vsub.s32 0, %v267_v45  ;;  %v276_v47 = vsub.s32 2, %v267_v45  ;;  %v264_v48 = vld [vmem:[%s2676_s2] sm:$0xf]  ;;  %v272_v49 = vsub.s32 1, %v267_v45 }
  0xdd   :  { %1348 = vmatprep.subr.bf16.mxu0 %v2444_v50  ;;  %1471 = vmatprep.subr.bf16.mxu1 %v2447_v51  ;;  %v280_v50 = vsub.s32 3, %v267_v45 }
  0xde   :  { %v269_v51 = vrot.slane %v264_v48, %v268_v46 }
  0xe0   :  { %1349 = vmatpush1.bf16.msra.mxu0 %v2442_v52  ;;  %1472 = vmatpush1.bf16.msra.mxu1 %v2445_v53  ;;  %v277_v52 = vrot.slane %v264_v48, %v276_v47  ;;  %v273_v53 = vrot.slane %v264_v48, %v272_v49  ;;  %v1870_v49 = vand.u32 127, %v266_v44 }
  0xe1   :  { %1350 = vmatprep.subr.bf16.mxu0 %v2450_v54  ;;  %1473 = vmatprep.subr.bf16.mxu1 %v2453_v55  ;;  %v281_v54 = vrot.slane %v264_v48, %v280_v50 }
  0xe2   :  { %vm1871_vm0 = vcmp.eq.s32.totalorder %v1870_v49, 0 }
  0xe4   :  { %1351 = vmatpush1.bf16.msra.mxu0 %v2448_v56  ;;  %1474 = vmatpush1.bf16.msra.mxu1 %v2451_v57 }
  0xe5   :  { %1352 = vmatprep.subr.bf16.mxu0 %v2456_v58  ;;  %1475 = vmatprep.subr.bf16.mxu1 %v2459_v59 }
  0xe8   :  { %1353 = vmatpush1.bf16.msra.mxu0 %v2454_v60  ;;  %1476 = vmatpush1.bf16.msra.mxu1 %v2457_v61 }
  0xe9   :  { %1354 = vmatprep.subr.bf16.mxu0 %v2462_v62  ;;  %1477 = vmatprep.subr.bf16.mxu1 %v2465_v63 }
  0xec   :  { %1355 = vmatpush1.bf16.msra.mxu0 %v2460_v0  ;;  %1478 = vmatpush1.bf16.msra.mxu1 %v2463_v1 }
  0xed   :  { %1356 = vmatprep.subr.bf16.mxu0 %v2468_v2  ;;  %1479 = vmatprep.subr.bf16.mxu1 %v2471_v3 }
  0xf0   :  { %1357 = vmatpush1.bf16.msra.mxu0 %v2466_v4  ;;  %1480 = vmatpush1.bf16.msra.mxu1 %v2469_v5 }
  0xf1   :  { %1358 = vmatprep.subr.bf16.mxu0 %v2474_v6  ;;  %1481 = vmatprep.subr.bf16.mxu1 %v2477_v7 }
  0xf4   :  { %1359 = vmatpush1.bf16.msra.mxu0 %v2472_v8  ;;  %1482 = vmatpush1.bf16.msra.mxu1 %v2475_v9 }
  0xf5   :  { %2115 = vmatprep.subr.bf16.mxu0 %v2478_v11  ;;  %2137 = vmatprep.subr.bf16.mxu1 %v2479_v12 }
  0xf7   :  { %1361 = vmatmul.mubr.bf16.vlgmr.msra.gmra.mrb[0].mxu0 %v70_v13  ;;  %1484 = vmatmul.mubr.bf16.vlgmr.msra.gmra.mrb[0].mxu1 %v70_v13  ;;  %v2082_v13 = vld [vmem:[%s2678_s4] ss:$0 sm:$0xff] }
  0xf8   :  { %2116 = vmatpush3.bf16.msra.mxu0 %v2480_v14  ;;  %2138 = vmatpush3.bf16.msra.mxu1 %v2481_v15 }
  0xf9   :  { %2117 = vmatprep.subr.bf16.mxu0 %v2482_v16  ;;  %2139 = vmatprep.subr.bf16.mxu1 %v2483_v17 }
  0xfc   :  { %2118 = vmatpush3.bf16.msra.mxu0 %v2484_v18  ;;  %2140 = vmatpush3.bf16.msra.mxu1 %v2485_v19 }
  0xfd   :  { %2119 = vmatprep.subr.bf16.mxu0 %v2486_v20  ;;  %2141 = vmatprep.subr.bf16.mxu1 %v2487_v21 }
 0x100   :  { %2120 = vmatpush3.bf16.msra.mxu0 %v2488_v22  ;;  %2142 = vmatpush3.bf16.msra.mxu1 %v2489_v23 }
 0x101   :  { %2121 = vmatprep.subr.bf16.mxu0 %v2490_v24  ;;  %2143 = vmatprep.subr.bf16.mxu1 %v2491_v25  ;;  %v2596_v24 = vmov 1  }
 0x102   :  { %2188 = vset.pattern.permute.xlu0 %v2596_v24  ;;  %2189 = vset.pattern.permute.xlu1 %v2596_v24 }
 0x104   :  { %2122 = vmatpush3.bf16.msra.mxu0 %v2492_v26  ;;  %2144 = vmatpush3.bf16.msra.mxu1 %v2493_v27 }
 0x105   :  { %2123 = vmatprep.subr.bf16.mxu0 %v2494_v28  ;;  %2145 = vmatprep.subr.bf16.mxu1 %v2495_v29 }
 0x108   :  { %2124 = vmatpush3.bf16.msra.mxu0 %v2496_v30  ;;  %2146 = vmatpush3.bf16.msra.mxu1 %v2497_v31 }
 0x109   :  { %2125 = vmatprep.subr.bf16.mxu0 %v2498_v32  ;;  %2147 = vmatprep.subr.bf16.mxu1 %v2499_v33 }
 0x10c   :  { %2126 = vmatpush3.bf16.msra.mxu0 %v2500_v34  ;;  %2148 = vmatpush3.bf16.msra.mxu1 %v2501_v35 }
 0x10d   :  { %2127 = vmatprep.subr.bf16.mxu0 %v2502_v36  ;;  %2149 = vmatprep.subr.bf16.mxu1 %v2503_v37 }
 0x110   :  { %2128 = vmatpush3.bf16.msra.mxu0 %v2504_v38  ;;  %2150 = vmatpush3.bf16.msra.mxu1 %v2505_v39 }
 0x111   :  { %2129 = vmatprep.subr.bf16.mxu0 %v2506_v40  ;;  %2151 = vmatprep.subr.bf16.mxu1 %v2507_v41 }
 0x114   :  { %2130 = vmatpush3.bf16.msra.mxu0 %v2508_v42  ;;  %2152 = vmatpush3.bf16.msra.mxu1 %v2509_v43 }
 0x1ca   :  { %v1362_v55 = vpop.f32.mrb[0].mxu0  ;;  %v1485_v56 = vpop.f32.mrb[0].mxu1 }
 0x1cb   :  { %v2159_v57 = vadd.f32 %v1362_v55, %v269_v51  ;;  %v2161_v58 = vadd.f32 %v1485_v56, %v277_v52  ;;  %v1364_v59 = vpop.f32.mrb[1].mxu0  ;;  %v1487_v60 = vpop.f32.mrb[1].mxu1 }
 0x1cc   :  { %v2160_v61 = vadd.f32 %v1364_v59, %v273_v53  ;;  %v2162_v62 = vadd.f32 %v1487_v60, %v281_v54  ;;  %v1366_v63 = vpop.f32.mrb[2].mxu0  ;;  %v1489_v0 = vpop.f32.mrb[2].mxu1 }
 0x1cd   :  { %v1492_v1 = vmax.f32 %v2159_v57, 0.0  ;;  %v1494_v2 = vmax.f32 %v2161_v58, 0.0  ;;  %v1367_v3 = vpop.f32.mrb[3].mxu0  ;;  %v1490_v4 = vpop.f32.mrb[3].mxu1 }
 0x1ce   :  { %v1493_v5 = vmax.f32 %v2160_v61, 0.0  ;;  %v1495_v6 = vmax.f32 %v2162_v62, 0.0 }
 0x1cf   :  { %v1496_v9 = vpack.c.bf16 %v1492_v1, %v1492_v1  ;;  %v1498_v10 = vpack.c.bf16 %v1494_v2, %v1494_v2 }
 0x1d0   :  { %v1497_v7 = vpack.c.bf16 %v1493_v5, %v1493_v5  ;;  %v1499_v8 = vpack.c.bf16 %v1495_v6, %v1495_v6 }
 0x1d2   :  { %1795 = vmatprep.mubr.bf16.mxu0 %v1497_v7  ;;  %1835 = vmatprep.mubr.bf16.mxu1 %v1499_v8 }
 0x1d3   :  { %1796 = vmatmul.mubr.bf16.vlgmr.msra.gmra.mrb[4].mxu0 %v1496_v9  ;;  %1836 = vmatmul.mubr.bf16.vlgmr.msra.gmra.mrb[4].mxu1 %v1498_v10 }
 0x2a6   :  { %v2131_v11 = vpop.f32.mrb[4].mxu0  ;;  %v2153_v12 = vpop.f32.mrb[4].mxu1 }
 0x2a7   :  { %v2132_v14 = vpop.f32.mrb[5].mxu0  ;;  %v2154_v15 = vpop.f32.mrb[5].mxu1 }
 0x2a8   :  { %v2133_v16 = vadd.f32 %v2132_v14, %v2131_v11  ;;  %v2155_v17 = vadd.f32 %v2154_v15, %v2153_v12  ;;  %v2134_v18 = vpop.f32.mrb[6].mxu0  ;;  %v2156_v19 = vpop.f32.mrb[6].mxu1 }
 0x2a9   :  { %v2135_v20 = vpop.f32.mrb[7].mxu0  ;;  %v2157_v21 = vpop.f32.mrb[7].mxu1 }
 0x2aa   :  { %v1798_v22 = vadd.f32 %v2133_v16, %v2082_v13 }
 0x2ac   :  { %v1838_v23 = vadd.f32 %v2155_v17, %v1798_v22 }
 0x2ae   :  { %1844 = vrot.lane.b32.xlu0 %v1838_v23, %s2595_s8 }
 0x320   :  { %v1845_v25 = vpop.permute.xlu0 %1844 }
 0x321   :  { %v1847_v26 = vsub.f32 %v1838_v23, %v1845_v25 }
 0x323   :  { %v1849_v27 = vand.u32 2147483647, %v1847_v26  ;;  %v1858_v28 = vsub.f32 0.0, %v1847_v26  ;;  %v1848_v39 = vmax.f32 %v1847_v26, 0.0 }
 0x325   :  { %v1850_v29 = vsub.f32 0.0, %v1849_v27  ;;  %v1860_v30 = vand.u32 2147483647, %v1858_v28  ;;  %v1859_v43 = vmax.f32 %v1858_v28, 0.0 }
 0x327   :  { %v1851_v31 = vmul.f32 1.442695, %v1850_v29  ;;  %v1861_v32 = vsub.f32 0.0, %v1860_v30 }
 0x329   :  { %2510 = vpow2.f32 %v1851_v31  ;;  %v1862_v33 = vmul.f32 1.442695, %v1861_v32 }
 0x32b   :  { %2512 = vpow2.f32 %v1862_v33 }
 0x333   :  { %v2511_v34 = vpop.eup %2510 }
 0x334   :  { %v1853_v35 = vadd.f32 1.0, %v2511_v34 }
 0x335   :  { %v2513_v36 = vpop.eup %2512 }
 0x336   :  { %2514 = vlog2.f32 %v1853_v35  ;;  %v1864_v37 = vadd.f32 1.0, %v2513_v36 }
 0x338   :  { %2516 = vlog2.f32 %v1864_v37 }
 0x340   :  { %v2515_v38 = vpop.eup %2514 }
 0x341   :  { %v1855_v40 = vmul.f32 0.6931472, %v2515_v38 }
 0x342   :  { %v2517_v41 = vpop.eup %2516 }
 0x343   :  { %v1856_v42 = vadd.f32 %v1855_v40, %v1848_v39  ;;  %v1866_v45 = vmul.f32 0.6931472, %v2517_v41 }
 0x345   :  { %v1857_v46 = vsub.f32 0.0, %v1856_v42  ;;  %v1867_v47 = vadd.f32 %v1866_v45, %v1859_v43 }
 0x347   :  { %1874 = vperm.xlu0 %2188, %v1857_v46   ;;  %v1868_v48 = vsub.f32 0.0, %v1867_v47 }
 0x349   :  { %1879 = vperm.xlu1 %2189, %v1868_v48  }
 0x3c6   :  { %v1875_v50 = vpop.permute.xlu0 %1874 }
 0x3c8   :  { %v1880_v51 = vpop.permute.xlu1 %1879 }
 0x3c9   :  { %v1882_v52 = vsel %vm1871_vm0, %v1875_v50, %v1880_v51 }
 0x3ca   :  { %1883 = vst [vmem:[%s2679_s5] sm:$0xff] %v1882_v52 }
 0x3cb   :  { %1888 = vsyncpa [#allocation3], 1 }
 0x3cc   :  { %1889 = vsyncpa [#allocation5], 1 }

</bundles_post_ra>
